<compile_context>
chip_gen: v6e
topology: v6e:2x2x1
jax: 0.10.0
libtpu: 0.0.40
codegen_flags: <defaults>
</compile_context>

<pallas_src>
import jax
import jax.numpy as jnp
from jax.experimental import pallas as pl
from jax.experimental.pallas import tpu as pltpu

LANES = 128
BLOCK_ROWS = 4096          # 4096 x 128 x 4 B = 2 MiB per f32 block (1 MiB bf16)
SMALL_INPUT_ELEMS = 32768  # below this, XLA's fused elementwise beats pallas launch


def _round_up(v, m):
    return ((v + m - 1) // m) * m


def _hat_coeffs(knot):
    """Sorted knots + hat coefficients in f32 (matches torch f32 param math)."""
    knot = jnp.sort(knot.astype(jnp.float32))
    k0, k1, k2 = knot[0], knot[1], knot[2]
    c0 = 1.0 / (k1 - k0)
    c1 = 1.0 / (k1 - k2) - 1.0 / (k1 - k0)
    c2 = -(c0 + c1)
    cr = 1.0 / (k2 - k1)          # only used by the fused min/max form
    return k0, k1, k2, c0, c1, c2, cr


def _hat_elementwise(x, k0, k1, k2, c0, c1, c2, exact):
    """Pure-JAX path (tiny inputs and the <128-element ragged tail)."""
    xf = x.astype(jnp.float32)
    if exact:
        relu = lambda v: jnp.maximum(v, 0.0)
        out = c0 * relu(xf - k0) + c1 * relu(xf - k1) + c2 * relu(xf - k2)
    else:
        cr = 1.0 / (k2 - k1)
        out = jnp.maximum(jnp.minimum(c0 * (xf - k0), cr * (k2 - xf)), 0.0)
    return out.astype(x.dtype)


def _make_hat_kernel(exact):
    def kernel(params_ref, x_ref, o_ref):
        # params_ref lives in SMEM (free scalar slot): [k0, k1, k2, c0, c1, c2, cr]
        x = x_ref[...].astype(jnp.float32)   # per-block f32 math, cast back on store
        zero = jnp.zeros((), jnp.float32)
        if exact:
            # Exact PyTorch 3-relu sum (11 VALU ops/elem; free filler on v5e/v6e).
            k0 = params_ref[0]
            k1 = params_ref[1]
            k2 = params_ref[2]
            c0 = params_ref[3]
            c1 = params_ref[4]
            c2 = params_ref[5]
            out = (c0 * jnp.maximum(x - k0, zero)
                   + c1 * jnp.maximum(x - k1, zero)
                   + c2 * jnp.maximum(x - k2, zero))
        else:
            # VALU-lean fused form (6 ops/elem) for the v7x bf16 path.
            k0 = params_ref[0]
            k2 = params_ref[2]
            c0 = params_ref[3]
            cr = params_ref[6]
            out = jnp.maximum(jnp.minimum(c0 * (x - k0), cr * (k2 - x)), zero)
        o_ref[...] = out.astype(o_ref.dtype)
    return kernel


def _hat_pallas_2d(x2d, params, exact):
    rows, lanes = x2d.shape
    dtype = x2d.dtype
    itemsize = dtype.itemsize
    row_align = max(8, 32 // itemsize)   # sublane packing: 8 (f32), 16 (bf16/fp16)

    # Pick a block that (a) stays <= BLOCK_ROWS (2 MiB f32), (b) gives >= 2 grid
    # steps whenever possible so v7x's 2 TensorCores both get work, (c) keeps
    # sublane alignment.  The ragged last block is masked by Pallas.
    half = _round_up(pl.cdiv(rows, 2), row_align)
    block_rows = max(row_align, min(BLOCK_ROWS, half))
    grid = (pl.cdiv(rows, block_rows),)

    n = rows * lanes
    cost = pl.CostEstimate(
        flops=(11 if exact else 6) * n,
        transcendentals=0,
        bytes_accessed=2 * n * itemsize,
    )

    return pl.pallas_call(
        _make_hat_kernel(exact),
        out_shape=jax.ShapeDtypeStruct((rows, lanes), dtype),
        grid=grid,
        in_specs=[
            pl.BlockSpec(memory_space=pltpu.MemorySpace.SMEM),
            pl.BlockSpec((block_rows, lanes), lambda i: (i, 0)),
        ],
        out_specs=pl.BlockSpec((block_rows, lanes), lambda i: (i, 0)),
        compiler_params=pltpu.CompilerParams(
            dimension_semantics=("parallel",)),
        cost_estimate=cost,
    )(params, x2d)


def hat_spline_forward(x, knot, *, exact_relu_sum=True, use_pallas=None):
    """HatSpline forward.  x: any-shape float array; knot: (3,).

    Output dtype == input dtype.  exact_relu_sum=True reproduces the PyTorch
    3-relu sum bit-for-bit (in f32 math); False uses the mathematically equal
    fused max/min form (6 VALU ops/elem, exactly 0 outside [k0, k2]).
    """
    k0, k1, k2, c0, c1, c2, cr = _hat_coeffs(knot)
    n = x.size

    if use_pallas is None:
        use_pallas = n >= SMALL_INPUT_ELEMS
    if not use_pallas or n < LANES:
        # Tiny-input fast path: XLA fused elementwise wins below launch overhead.
        return _hat_elementwise(x, k0, k1, k2, c0, c1, c2, exact_relu_sum)

    params = jnp.stack([k0, k1, k2, c0, c1, c2, cr])   # f32, rides SMEM

    x_flat = x.reshape(-1)          # metadata-only view of NCHW
    rem = n % LANES
    main = n - rem

    out_main = _hat_pallas_2d(
        x_flat[:main].reshape(main // LANES, LANES), params, exact_relu_sum)
    out_flat = out_main.reshape(-1)
    if rem:
        # <128-element tail: pure-JAX (no whole-array pad / slice).
        tail = _hat_elementwise(x_flat[main:], k0, k1, k2, c0, c1, c2,
                                exact_relu_sum)
        out_flat = jnp.concatenate([out_flat, tail])
    return out_flat.reshape(x.shape)


def hat_spline_ref(x, knot):
    """Pure-JAX reference matching the PyTorch forward (f32 math, input dtype out)."""
    k0, k1, k2, c0, c1, c2, _ = _hat_coeffs(knot)
    return _hat_elementwise(x, k0, k1, k2, c0, c1, c2, True)


if __name__ == "__main__":
    key = jax.random.PRNGKey(0)
    ka, kb, kc = jax.random.split(key, 3)

    knot = jnp.array([0.0, 0.5, 1.0], dtype=jnp.float32)          # module default
    knot_unsorted = jnp.array([0.9, 0.1, 0.5], dtype=jnp.float32)  # exercises sort

    # 1) Small module-sized NCHW input -> tiny-input fast path (pure-JAX).
    x_small = jax.random.uniform(ka, (2, 4, 16, 16), dtype=jnp.float32)
    # 2) Larger f32 input (65536 elems, 128-divisible) -> Pallas path.
    x_big = jax.random.uniform(kb, (2, 8, 64, 64), dtype=jnp.float32,
                               minval=-0.25, maxval=1.25)
    # 3) Ragged size (67410 % 128 == 82) -> Pallas prefix + pure-JAX tail.
    x_ragged = jax.random.uniform(kc, (2, 3, 105, 107), dtype=jnp.float32,
                                  minval=-0.25, maxval=1.25)
    # 4) bf16 input: dtype preserved end-to-end (half the HBM traffic).
    x_bf16 = x_big.astype(jnp.bfloat16)

    cases = [
        (x_small, knot, True, 1e-5),
        (x_big, knot_unsorted, True, 1e-5),
        (x_ragged, knot, True, 1e-5),
        (x_big, knot, False, 1e-4),   # fused min/max (VALU-lean) variant
    ]
    for xin, kt, exact, tol in cases:
        out = jax.block_until_ready(
            hat_spline_forward(xin, kt, exact_relu_sum=exact))
        ref = hat_spline_ref(xin, kt)
        assert out.shape == xin.shape and out.dtype == xin.dtype
        assert jnp.allclose(out, ref, atol=tol, rtol=tol)

    out_bf16 = jax.block_until_ready(hat_spline_forward(x_bf16, knot))
    ref_bf16 = hat_spline_ref(x_bf16, knot)
    assert out_bf16.shape == x_bf16.shape and out_bf16.dtype == jnp.bfloat16
    assert jnp.allclose(out_bf16.astype(jnp.float32),
                        ref_bf16.astype(jnp.float32), atol=2e-2, rtol=2e-2)

    print("KERNEL_OK")
</pallas_src>

<mosaic_0001>
module attributes {stable_mosaic.version = 11 : i64} {
  func.func @kernel(%arg0: i32, %arg1: memref<7xf32, #tpu.memory_space<smem>>, %arg2: memref<256x128xf32, #tpu.memory_space<vmem>>, %arg3: memref<256x128xf32, #tpu.memory_space<vmem>>) attributes {dimension_semantics = [#tpu.dimension_semantics<parallel>], iteration_bounds = array<i64: 2>, scalar_prefetch = 0 : i64, scratch_operands = 0 : i64, tpu.core_type = #tpu.core_type<tc>, window_params = [{transform_indices = @transform_0, window_bounds = array<i64: 7>}, {transform_indices = @transform_1, window_bounds = array<i64: 256, 128>}, {transform_indices = @transform_2, window_bounds = array<i64: 256, 128>}]} {
    %c0 = arith.constant 0 : index
    %c0_0 = arith.constant 0 : index
    %0 = vector.load %arg2[%c0, %c0_0] : memref<256x128xf32, #tpu.memory_space<vmem>>, vector<256x128xf32>
    %c0_1 = arith.constant 0 : index
    %1 = memref.load %arg1[%c0_1] : memref<7xf32, #tpu.memory_space<smem>>
    %c1 = arith.constant 1 : index
    %2 = memref.load %arg1[%c1] : memref<7xf32, #tpu.memory_space<smem>>
    %c2 = arith.constant 2 : index
    %3 = memref.load %arg1[%c2] : memref<7xf32, #tpu.memory_space<smem>>
    %c3 = arith.constant 3 : index
    %4 = memref.load %arg1[%c3] : memref<7xf32, #tpu.memory_space<smem>>
    %c4 = arith.constant 4 : index
    %5 = memref.load %arg1[%c4] : memref<7xf32, #tpu.memory_space<smem>>
    %c5 = arith.constant 5 : index
    %6 = memref.load %arg1[%c5] : memref<7xf32, #tpu.memory_space<smem>>
    %7 = vector.broadcast %1 : f32 to vector<256x128xf32>
    %8 = arith.subf %0, %7 : vector<256x128xf32>
    %cst = arith.constant 0.000000e+00 : f32
    %9 = vector.broadcast %cst : f32 to vector<256x128xf32>
    %10 = arith.maximumf %8, %9 : vector<256x128xf32>
    %11 = vector.broadcast %4 : f32 to vector<256x128xf32>
    %12 = arith.mulf %11, %10 : vector<256x128xf32>
    %13 = vector.broadcast %2 : f32 to vector<256x128xf32>
    %14 = arith.subf %0, %13 : vector<256x128xf32>
    %cst_2 = arith.constant 0.000000e+00 : f32
    %15 = vector.broadcast %cst_2 : f32 to vector<256x128xf32>
    %16 = arith.maximumf %14, %15 : vector<256x128xf32>
    %17 = vector.broadcast %5 : f32 to vector<256x128xf32>
    %18 = arith.mulf %17, %16 : vector<256x128xf32>
    %19 = arith.addf %12, %18 : vector<256x128xf32>
    %20 = vector.broadcast %3 : f32 to vector<256x128xf32>
    %21 = arith.subf %0, %20 : vector<256x128xf32>
    %cst_3 = arith.constant 0.000000e+00 : f32
    %22 = vector.broadcast %cst_3 : f32 to vector<256x128xf32>
    %23 = arith.maximumf %21, %22 : vector<256x128xf32>
    %24 = vector.broadcast %6 : f32 to vector<256x128xf32>
    %25 = arith.mulf %24, %23 : vector<256x128xf32>
    %26 = arith.addf %19, %25 : vector<256x128xf32>
    %c0_4 = arith.constant 0 : index
    %c0_5 = arith.constant 0 : index
    %27 = vector.load %arg3[%c0_4, %c0_5] : memref<256x128xf32, #tpu.memory_space<vmem>>, vector<256x128xf32>
    tpu.vector_store %arg3[%c0_4, %c0_5], %26 {strides = array<i32>} : memref<256x128xf32, #tpu.memory_space<vmem>>, vector<256x128xf32>,
    return
  }
  func.func @transform_0(%arg0: i32) -> i32 {
    %c0_i32 = arith.constant 0 : i32
    %c0_i32_0 = arith.constant 0 : i32
    return %c0_i32 : i32
  }
  func.func @transform_1(%arg0: i32) -> (i32, i32) {
    %c0_i32 = arith.constant 0 : i32
    %c0_i32_0 = arith.constant 0 : i32
    return %arg0, %c0_i32 : i32, i32
  }
  func.func @transform_2(%arg0: i32) -> (i32, i32) {
    %c0_i32 = arith.constant 0 : i32
    %c0_i32_0 = arith.constant 0 : i32
    return %arg0, %c0_i32 : i32, i32
  }
}

</mosaic_0001>

<bundles_post_ra>
// kernel: tpu_custom_call.1
= control target key start
LH: loop header
LB: loop body
LE: loop exit
PB: predicated region body
PF: predicated region fallthrough
CT: control target
= control target key end

     0   :  { %7 = vsyncpa [#allocation5], 0  ;;  %s1368_s0 = inlined_call_operand.hbm [shape: f32[7], index: 0, kind: input, shape index: {}]   ;;  %s1369_s1 = inlined_call_operand.hbm [shape: f32[512,128], index: 1, kind: input, shape index: {}]   ;;  %s1370_s2 = inlined_call_operand.hbm [shape: f32[512,128], index: 2, kind: output, shape index: {}]  }
   0x1   :  { %8 = vsyncpa [#allocation3], 0 }
   0x2   :  { %10 = vsyncpa [#allocation3 + $0x1], 0 }
   0x3   :  { %11 = vsyncpa [#allocation4], 0 }
   0x4   :  { %13 = vsyncpa [#allocation4 + $0x1], 0  ;;  %s918_s9 = smov 0   ;;  %s920_s10 = smov 0  }
   0x5   :  { %s922_s11 = smov 0   ;;  %s924_s12 = smov 0  }
   0x6 LB: > { %s939_s13 = sadd.s32 4294967295, %s894_s12   ;;  %s703_s14 = sadd.s32 4294967294, %s894_s12   ;;  %s894_s12 = sphi %s924_s12, %s1392_s12   ;;  %s890_s11 = sphi %s922_s11, %s1391_s11   ;;  %s886_s10 = sphi %s920_s10, %s1390_s10   ;;  %s882_s9 = sphi %s918_s9, %s1389_s9  }
   0x7   : > { %s943_s15 = sadd.s32 1, %s894_s12   ;;  %s47_s16 = sadd.s32 1, %s890_s11 }
   0x8   : > { %s44_s17 = ssub.s32 %s894_s12, %s943_s15  ;;  %p54_p0 = scmp.ne.s32.totalorder %s890_s11, %s886_s10 }
   0x9   : > { %p45_p1 = scmp.eq.s32.totalorder %s44_s17, 0  ;;  %p55_p2 = scmp.eq.s32.totalorder %s894_s12, 0 }
   0xa   : > { %p60_p3 = scmp.ne.s32.totalorder %s886_s10, %s882_s9  ;;  %p1371_p4 = scmp.eq.s32.totalorder %s939_s13, 0 }
   0xb   : > { %s955_s18 = scalar_select %p45_p1, %s890_s11, %s47_s16  }
   0xc   : > { %p957_p5 = por %p55_p2, %p54_p0  ;;  %p963_p6 = por %p1371_p4, %p60_p3 }
   0xd   : > { %p84_p7 = scmp.eq.s32.totalorder %s939_s13, 1  ;;  %p90_p8 = scmp.eq.s32.totalorder %s703_s14, 1 }
   0xe   : > { %s1376_s20 = scalar_select %p963_p6, 1, 0 }
   0xf   : > { %p704_p9 = scmp.ge.s32.totalorder %s894_s12, 1  ;;  %p97_p10 = scmp.lt.s32.totalorder %s894_s12, 3 }
  0x10   : > { %p970_p11 = por %p84_p7, %p54_p0  ;;  %p974_p12 = por %p90_p8, %p60_p3 }
  0x11   : > { %p978_p13 = pnand %p704_p9, %p97_p10  ;;  %p747_p4 = scmp.lt.s32.totalorder %s894_s12, 2 }
  0x12   : > { %s1377_s21 = scalar_select %p970_p11, 1, 0 }
  0x13   : > { %s1378_s22 = scalar_select %p974_p12, 1, 0 }
  0x14   : > { %s1379_s23 = scalar_select %p978_p13, 1, 0 }
  0x15   : > { %p734_p2 = pneg %p978_p13  ;;  %s119_s24 = sand.u32 1, %s890_s11  }
  0x16   : > { %s724_s25 = sshll.u32 %s894_s12, 12  ;;  %p1380_p6 = scmp.eq.s32.totalorder %s939_s13, 0 }
  0x17   : > { %p992_p7 = pnand %p747_p4, %p957_p5  ;;  %s707_s27 = sshll.u32 %s119_s24, 8 }
  0x18   : > { %p735_p0 = pnand %p734_p2, %p1380_p6  ;;  %s896_s28 = smov [#allocation2]  }
  0x19   : > { %s1002_s5 = scalar_lea.hbm %s1369_s1, %s724_s25  ;;  %s123_s6 = scalar_lea.vmem [#allocation6], %s707_s27 }
  0x1a   : > { %737 = dma.hbm_to_smem (!%p735_p0), %s1368_s0, 16, %s896_s28, [#allocation5]  }
  0x1b   : > { %s130_s7 = sshll.u32 %s123_s6, 4  ;;  %s1006_s8 = scalar_lea.sflag [#allocation3], %s119_s24  ;;  %s1004_s7 = int_to_ptr.vmem [resolvable:$true] %s130_s7 }
  0x1c   : > { %s798_s14 = scalar_lea.hbm %s1002_s5, 4096  ;;  %p800_p4 = pneg %p992_p7 }
  0x1d   : > { %p799_p3 = scmp.ne.s32.totalorder %s1002_s5, %s798_s14  ;;  %s803_s19 = scalar_lea.hbm %s1369_s1, 8192 }
  0x1e   : > { %p804_p8 = scmp.lt.s32.totalorder %s1002_s5, %s1369_s1  ;;  %p805_p9 = scmp.lt.s32.totalorder %s803_s19, %s798_s14 }
  0x1f   : > { %p801_p5 = pnand %p800_p4, %p799_p3 }
  0x20   : > { %p806_p10 = por %p805_p9, %p804_p8 }
  0x21   : > { %p802_p6 = pneg %p801_p5 }
  0x23   : > { %p807_p2 = pnand %p806_p10, %p802_p6 }
  0x25   : > { %810 = shalt.err (!%p807_p2)
}
  0x26   : > { %s811_s24 = scalar_lea.vmem %s1004_s7, 4096  ;;  %s897_s27 = smov [#allocation6]  }
  0x27   : > { %p812_p0 = scmp.ne.s32.totalorder %s1004_s7, %s811_s24  ;;  %s816_s29 = sshll.u32 %s897_s27, 4  ;;  %s817_s29 = int_to_ptr.vmem [resolvable:$false] %s816_s29 }
  0x28   : > { %s818_s30 = scalar_lea.vmem %s817_s29, 8192  ;;  %p819_p5 = scmp.lt.s32.totalorder %s1004_s7, %s817_s29 }
  0x29   : > { %p814_p1 = pnand %p812_p0, %p800_p4  ;;  %p820_p12 = scmp.lt.s32.totalorder %s818_s30, %s811_s24 }
  0x2b   : > { %p815_p3 = pneg %p814_p1  ;;  %p821_p11 = por %p820_p12, %p819_p5 }
  0x2d   : > { %p822_p13 = pnand %p821_p11, %p815_p3 }
  0x2f   : > { %825 = shalt.err (!%p822_p13)
}
  0x30   : > { %s898_s3 = smov 128   ;;  %s899_s4 = smov 8  }
  0x31   : > { %741 = dma.hbm_to_vmem [thread:$0]  (!%p992_p7), %s1002_s5, 4096, %s1004_s7, %s1006_s8, %s898_s3, %s898_s3, %s899_s4  }
  0x32   : > { %p1382_p4 = scmp.ne.s32.totalorder %s1379_s23, 0 }
  0x33   : > { %p1383_p1 = scmp.eq.s32.totalorder (!%p1382_p4), %s939_s13, 0 }
  0x34   : > { %142 = sbr.rel (%p1382_p4) target bundleno = 179 (0xb3), region = 28 }
  0x39   : > { %869 = dma.done.wait (%p1383_p1), [#allocation5], 16   ;;  %p1384_p6 = pmov %p1383_p1 }
  0x3a   : > { %s1034_s6 = sand.u32 1, %s886_s10   ;;  %p1385_p11 = scmp.ne.s32.totalorder %s1376_s20, 0 }
  0x3b   : > { %871 = vsyncadd (%p1384_p6), [#allocation5], 4294967280  ;;  %s712_s14 = sshll.u32 %s1034_s6, 8  ;;  %s149_s16 = scalar_lea.sflag [#allocation3], %s1034_s6 }
  0x3c   : > { %s1040_s26 = scalar_lea.vmem [#allocation6], %s712_s14 }
  0x3d   : > { %873 = dma.done.wait (%p1385_p11), %s149_s16, 4096  }
  0x3e   : > { %875 = vsyncadd (%p1385_p11), %s149_s16, 4294963200 }
  0x3f   : > { %157 = sfence }
  0x40   : > { %s208_s23 = sld [smem:[#allocation2]]  ;;  %v176_v0 = vld [vmem:[%s1040_s26] sm:$0xff]  ;;  %v177_v1 = vld [vmem:[%s1040_s26 + $0x8] sm:$0xff]  ;;  %v178_v2 = vld [vmem:[%s1040_s26 + $0x10] sm:$0xff]  ;;  %s1089_s20 = scalar_lea.vmem [#allocation7], %s712_s14 }
  0x41   : > { %s714_s5 = sld [smem:[#allocation2 + $0x1]]  ;;  %v179_v20 = vld [vmem:[%s1040_s26 + $0x18] sm:$0xff]  ;;  %v180_v33 = vld [vmem:[%s1040_s26 + $0x20] sm:$0xff]  ;;  %v181_v46 = vld [vmem:[%s1040_s26 + $0x28] sm:$0xff]  ;;  %s725_s25 = sshll.u32 %s939_s13, 12 }
  0x42   : > { %s715_s7 = sld [smem:[#allocation2 + $0x2]]  ;;  %v182_v59 = vld [vmem:[%s1040_s26 + $0x30] sm:$0xff]  ;;  %s618_s28 = sshll.u32 %s1089_s20, 4  ;;  %s1324_s28 = int_to_ptr.vmem [resolvable:$true] %s618_s28 }
  0x43   : > { %s716_s8 = sld [smem:[#allocation2 + $0x3]]  ;;  %s1322_s29 = scalar_lea.hbm %s1370_s2, %s725_s25 }
  0x44   : > { %s717_s17 = sld [smem:[#allocation2 + $0x4]]  ;;  %s605_s13 = scalar_lea.sflag [#allocation4], %s1034_s6 }
  0x45   : > { %s718_s19 = sld [smem:[#allocation2 + $0x5]]  ;;  %s826_s30 = scalar_lea.vmem %s1324_s28, 4096 }
  0x46   : > { %v1049_v3 = vstv %s208_s23  ;;  %p827_p12 = scmp.ne.s32.totalorder %s1324_s28, %s826_s30  ;;  %p1386_p13 = scmp.ne.s32.totalorder %s1377_s21, 0 }
  0x47   : > { %v215_v4 = vsub.f32 %v176_v0, %v1049_v3  ;;  %v1052_v5 = vstv %s714_s5  ;;  %v216_v6 = vsub.f32 %v177_v1, %v1049_v3  ;;  %v217_v7 = vsub.f32 %v178_v2, %v1049_v3  ;;  %s900_s3 = smov [#allocation7]  }
  0x48   : > { %v313_v8 = vsub.f32 %v176_v0, %v1052_v5  ;;  %v1057_v9 = vstv %s715_s7  ;;  %v314_v10 = vsub.f32 %v177_v1, %v1052_v5  ;;  %v315_v11 = vsub.f32 %v178_v2, %v1052_v5  ;;  %p828_p7 = pnand %p827_p12, %p1386_p13  ;;  %s830_s4 = sshll.u32 %s900_s3, 4  ;;  %s831_s4 = int_to_ptr.vmem [resolvable:$false] %s830_s4 }
  0x49   : > { %v247_v12 = vmax.f32 %v215_v4, 0.0  ;;  %v1061_v13 = vstv %s716_s8  ;;  %v443_v14 = vsub.f32 %v176_v0, %v1057_v9  ;;  %v248_v15 = vmax.f32 %v216_v6, 0.0  ;;  %s832_s14 = scalar_lea.vmem %s831_s4, 8192  ;;  %p833_p9 = scmp.lt.s32.totalorder %s1324_s28, %s831_s4 }
  0x4a   : > { %v345_v16 = vmax.f32 %v313_v8, 0.0  ;;  %v1064_v17 = vstv %s717_s17  ;;  %v346_v18 = vmax.f32 %v314_v10, 0.0  ;;  %v444_v19 = vsub.f32 %v177_v1, %v1057_v9  ;;  %p829_p8 = pneg %p828_p7  ;;  %p834_p10 = scmp.lt.s32.totalorder %s832_s14, %s826_s30 }
  0x4b   : > { %v280_v21 = vmul.f32 %v1061_v13, %v247_v12  ;;  %v475_v22 = vmax.f32 %v443_v14, 0.0  ;;  %v1069_v23 = vstv %s718_s19  ;;  %v281_v24 = vmul.f32 %v1061_v13, %v248_v15 }
  0x4c   : > { %v378_v25 = vmul.f32 %v1064_v17, %v345_v16  ;;  %v379_v26 = vmul.f32 %v1064_v17, %v346_v18  ;;  %v476_v27 = vmax.f32 %v444_v19, 0.0  ;;  %v249_v28 = vmax.f32 %v217_v7, 0.0  ;;  %p835_p2 = por %p834_p10, %p833_p9 }
  0x4d   : > { %v508_v29 = vmul.f32 %v1069_v23, %v475_v22  ;;  %v347_v30 = vmax.f32 %v315_v11, 0.0  ;;  %v445_v31 = vsub.f32 %v178_v2, %v1057_v9  ;;  %v218_v32 = vsub.f32 %v179_v20, %v1049_v3  ;;  %v183_v11 = vld [vmem:[%s1040_s26 + $0x38] sm:$0xff] }
  0x4e   : > { %v410_v34 = vadd.f32 %v378_v25, %v280_v21  ;;  %v411_v35 = vadd.f32 %v379_v26, %v281_v24  ;;  %v509_v36 = vmul.f32 %v1069_v23, %v476_v27  ;;  %v282_v37 = vmul.f32 %v1061_v13, %v249_v28  ;;  %v184_v27 = vld [vmem:[%s1040_s26 + $0x40] sm:$0xff]  ;;  %p836_p0 = pnand %p835_p2, %p829_p8 }
  0x4f   : > { %v380_v38 = vmul.f32 %v1064_v17, %v347_v30  ;;  %v477_v39 = vmax.f32 %v445_v31, 0.0  ;;  %v250_v40 = vmax.f32 %v218_v32, 0.0  ;;  %v316_v41 = vsub.f32 %v179_v20, %v1052_v5 }
  0x50   : > { %v540_v42 = vadd.f32 %v508_v29, %v410_v34  ;;  %v541_v43 = vadd.f32 %v509_v36, %v411_v35  ;;  %v446_v44 = vsub.f32 %v179_v20, %v1057_v9  ;;  %v219_v45 = vsub.f32 %v180_v33, %v1049_v3  ;;  %v185_v36 = vld [vmem:[%s1040_s26 + $0x48] sm:$0xff] }
  0x51   : > { %v412_v47 = vadd.f32 %v380_v38, %v282_v37  ;;  %v510_v48 = vmul.f32 %v1069_v23, %v477_v39  ;;  %v283_v49 = vmul.f32 %v1061_v13, %v250_v40  ;;  %v348_v50 = vmax.f32 %v316_v41, 0.0 }
  0x52   : > { %572 = vst [vmem:[%s1089_s20] sm:$0xff] %v540_v42  ;;  %573 = vst [vmem:[%s1089_s20 + $0x8] sm:$0xff] %v541_v43  ;;  %v478_v51 = vmax.f32 %v446_v44, 0.0  ;;  %v251_v52 = vmax.f32 %v219_v45, 0.0  ;;  %v317_v53 = vsub.f32 %v180_v33, %v1052_v5  ;;  %v447_v54 = vsub.f32 %v180_v33, %v1057_v9 }
  0x53   : > { %v542_v55 = vadd.f32 %v510_v48, %v412_v47  ;;  %v381_v56 = vmul.f32 %v1064_v17, %v348_v50  ;;  %v220_v57 = vsub.f32 %v181_v46, %v1049_v3  ;;  %v318_v58 = vsub.f32 %v181_v46, %v1052_v5 }
  0x54   : > { %v511_v60 = vmul.f32 %v1069_v23, %v478_v51  ;;  %v284_v61 = vmul.f32 %v1061_v13, %v251_v52  ;;  %v349_v62 = vmax.f32 %v317_v53, 0.0  ;;  %v479_v63 = vmax.f32 %v447_v54, 0.0 }
  0x55   : > { %574 = vst [vmem:[%s1089_s20 + $0x10] sm:$0xff] %v542_v55  ;;  %v413_v0 = vadd.f32 %v381_v56, %v283_v49  ;;  %v252_v1 = vmax.f32 %v220_v57, 0.0  ;;  %v350_v2 = vmax.f32 %v318_v58, 0.0  ;;  %v448_v4 = vsub.f32 %v181_v46, %v1057_v9  ;;  %v186_v49 = vld [vmem:[%s1040_s26 + $0x50] sm:$0xff]  ;;  %v187_v58 = vld [vmem:[%s1040_s26 + $0x58] sm:$0xff] }
  0x56   : > { %v382_v6 = vmul.f32 %v1064_v17, %v349_v62  ;;  %v512_v7 = vmul.f32 %v1069_v23, %v479_v63  ;;  %v221_v8 = vsub.f32 %v182_v59, %v1049_v3  ;;  %v319_v10 = vsub.f32 %v182_v59, %v1052_v5 }
  0x57   : > { %v543_v12 = vadd.f32 %v511_v60, %v413_v0  ;;  %v285_v14 = vmul.f32 %v1061_v13, %v252_v1  ;;  %v383_v15 = vmul.f32 %v1064_v17, %v350_v2  ;;  %v480_v16 = vmax.f32 %v448_v4, 0.0 }
  0x58   : > { %v414_v18 = vadd.f32 %v382_v6, %v284_v61  ;;  %v253_v19 = vmax.f32 %v221_v8, 0.0  ;;  %v351_v20 = vmax.f32 %v319_v10, 0.0  ;;  %v449_v21 = vsub.f32 %v182_v59, %v1057_v9  ;;  %v188_v10 = vld [vmem:[%s1040_s26 + $0x60] sm:$0xff] }
  0x59   : > { %575 = vst [vmem:[%s1089_s20 + $0x18] sm:$0xff] %v543_v12  ;;  %v415_v22 = vadd.f32 %v383_v15, %v285_v14  ;;  %v513_v24 = vmul.f32 %v1069_v23, %v480_v16  ;;  %v222_v25 = vsub.f32 %v183_v11, %v1049_v3  ;;  %v320_v26 = vsub.f32 %v183_v11, %v1052_v5 }
  0x5a   : > { %v544_v28 = vadd.f32 %v512_v7, %v414_v18  ;;  %v286_v29 = vmul.f32 %v1061_v13, %v253_v19  ;;  %v384_v30 = vmul.f32 %v1064_v17, %v351_v20  ;;  %v481_v31 = vmax.f32 %v449_v21, 0.0 }
  0x5b   : > { %v545_v32 = vadd.f32 %v513_v24, %v415_v22  ;;  %v254_v33 = vmax.f32 %v222_v25, 0.0  ;;  %v352_v34 = vmax.f32 %v320_v26, 0.0  ;;  %v450_v35 = vsub.f32 %v183_v11, %v1057_v9  ;;  %v189_v26 = vld [vmem:[%s1040_s26 + $0x68] sm:$0xff] }
  0x5c   : > { %576 = vst [vmem:[%s1089_s20 + $0x20] sm:$0xff] %v544_v28  ;;  %v416_v37 = vadd.f32 %v384_v30, %v286_v29  ;;  %v514_v38 = vmul.f32 %v1069_v23, %v481_v31  ;;  %v223_v39 = vsub.f32 %v184_v27, %v1049_v3  ;;  %v321_v40 = vsub.f32 %v184_v27, %v1052_v5 }
  0x5d   : > { %577 = vst [vmem:[%s1089_s20 + $0x28] sm:$0xff] %v545_v32  ;;  %v287_v41 = vmul.f32 %v1061_v13, %v254_v33  ;;  %v385_v42 = vmul.f32 %v1064_v17, %v352_v34  ;;  %v482_v43 = vmax.f32 %v450_v35, 0.0  ;;  %v451_v44 = vsub.f32 %v184_v27, %v1057_v9 }
  0x5e   : > { %v546_v45 = vadd.f32 %v514_v38, %v416_v37  ;;  %v255_v46 = vmax.f32 %v223_v39, 0.0  ;;  %v353_v47 = vmax.f32 %v321_v40, 0.0  ;;  %v224_v48 = vsub.f32 %v185_v36, %v1049_v3  ;;  %v190_v39 = vld [vmem:[%s1040_s26 + $0x70] sm:$0xff] }
  0x5f   : > { %v417_v50 = vadd.f32 %v385_v42, %v287_v41  ;;  %v515_v51 = vmul.f32 %v1069_v23, %v482_v43  ;;  %v483_v52 = vmax.f32 %v451_v44, 0.0  ;;  %v322_v53 = vsub.f32 %v185_v36, %v1052_v5 }
  0x60   : > { %578 = vst [vmem:[%s1089_s20 + $0x30] sm:$0xff] %v546_v45  ;;  %v288_v54 = vmul.f32 %v1061_v13, %v255_v46  ;;  %v386_v55 = vmul.f32 %v1064_v17, %v353_v47  ;;  %v256_v56 = vmax.f32 %v224_v48, 0.0  ;;  %v452_v57 = vsub.f32 %v185_v36, %v1057_v9 }
  0x61   : > { %v547_v59 = vadd.f32 %v515_v51, %v417_v50  ;;  %v516_v60 = vmul.f32 %v1069_v23, %v483_v52  ;;  %v354_v61 = vmax.f32 %v322_v53, 0.0  ;;  %v225_v62 = vsub.f32 %v186_v49, %v1049_v3  ;;  %v191_v52 = vld [vmem:[%s1040_s26 + $0x78] sm:$0xff] }
  0x62   : > { %v418_v63 = vadd.f32 %v386_v55, %v288_v54  ;;  %v289_v0 = vmul.f32 %v1061_v13, %v256_v56  ;;  %v484_v1 = vmax.f32 %v452_v57, 0.0  ;;  %v323_v2 = vsub.f32 %v186_v49, %v1052_v5 }
  0x63   : > { %579 = vst [vmem:[%s1089_s20 + $0x38] sm:$0xff] %v547_v59  ;;  %v387_v4 = vmul.f32 %v1064_v17, %v354_v61  ;;  %v257_v6 = vmax.f32 %v225_v62, 0.0  ;;  %v453_v7 = vsub.f32 %v186_v49, %v1057_v9  ;;  %v226_v8 = vsub.f32 %v187_v58, %v1049_v3  ;;  %v192_v61 = vld [vmem:[%s1040_s26 + $0x80] sm:$0xff] }
  0x64   : > { %v548_v11 = vadd.f32 %v516_v60, %v418_v63  ;;  %v517_v12 = vmul.f32 %v1069_v23, %v484_v1  ;;  %v355_v14 = vmax.f32 %v323_v2, 0.0  ;;  %v324_v15 = vsub.f32 %v187_v58, %v1052_v5 }
  0x65   : > { %v419_v16 = vadd.f32 %v387_v4, %v289_v0  ;;  %v290_v18 = vmul.f32 %v1061_v13, %v257_v6  ;;  %v485_v19 = vmax.f32 %v453_v7, 0.0  ;;  %v258_v20 = vmax.f32 %v226_v8, 0.0 }
  0x66   : > { %580 = vst [vmem:[%s1089_s20 + $0x40] sm:$0xff] %v548_v11  ;;  %v388_v21 = vmul.f32 %v1064_v17, %v355_v14  ;;  %v356_v22 = vmax.f32 %v324_v15, 0.0  ;;  %v454_v24 = vsub.f32 %v187_v58, %v1057_v9  ;;  %v227_v25 = vsub.f32 %v188_v10, %v1049_v3  ;;  %v193_v14 = vld [vmem:[%s1040_s26 + $0x88] sm:$0xff] }
  0x67   : > { %v549_v27 = vadd.f32 %v517_v12, %v419_v16  ;;  %v518_v28 = vmul.f32 %v1069_v23, %v485_v19  ;;  %v291_v29 = vmul.f32 %v1061_v13, %v258_v20  ;;  %v325_v30 = vsub.f32 %v188_v10, %v1052_v5 }
  0x68   : > { %v420_v31 = vadd.f32 %v388_v21, %v290_v18  ;;  %v389_v32 = vmul.f32 %v1064_v17, %v356_v22  ;;  %v486_v33 = vmax.f32 %v454_v24, 0.0  ;;  %v259_v34 = vmax.f32 %v227_v25, 0.0 }
  0x69   : > { %581 = vst [vmem:[%s1089_s20 + $0x48] sm:$0xff] %v549_v27  ;;  %v357_v35 = vmax.f32 %v325_v30, 0.0  ;;  %v455_v36 = vsub.f32 %v188_v10, %v1057_v9  ;;  %v228_v37 = vsub.f32 %v189_v26, %v1049_v3  ;;  %v326_v38 = vsub.f32 %v189_v26, %v1052_v5 }
  0x6a   : > { %v550_v40 = vadd.f32 %v518_v28, %v420_v31  ;;  %v421_v41 = vadd.f32 %v389_v32, %v291_v29  ;;  %v519_v42 = vmul.f32 %v1069_v23, %v486_v33  ;;  %v292_v43 = vmul.f32 %v1061_v13, %v259_v34  ;;  %v194_v29 = vld [vmem:[%s1040_s26 + $0x90] sm:$0xff] }
  0x6b   : > { %v390_v44 = vmul.f32 %v1064_v17, %v357_v35  ;;  %v487_v45 = vmax.f32 %v455_v36, 0.0  ;;  %v260_v46 = vmax.f32 %v228_v37, 0.0  ;;  %v358_v47 = vmax.f32 %v326_v38, 0.0 }
  0x6c   : > { %582 = vst [vmem:[%s1089_s20 + $0x50] sm:$0xff] %v550_v40  ;;  %v551_v48 = vadd.f32 %v519_v42, %v421_v41  ;;  %v456_v49 = vsub.f32 %v189_v26, %v1057_v9  ;;  %v229_v50 = vsub.f32 %v190_v39, %v1049_v3  ;;  %v327_v51 = vsub.f32 %v190_v39, %v1052_v5  ;;  %v195_v42 = vld [vmem:[%s1040_s26 + $0x98] sm:$0xff] }
  0x6d   : > { %v422_v53 = vadd.f32 %v390_v44, %v292_v43  ;;  %v520_v54 = vmul.f32 %v1069_v23, %v487_v45  ;;  %v293_v55 = vmul.f32 %v1061_v13, %v260_v46  ;;  %v391_v56 = vmul.f32 %v1064_v17, %v358_v47 }
  0x6e   : > { %583 = vst [vmem:[%s1089_s20 + $0x58] sm:$0xff] %v551_v48  ;;  %v488_v57 = vmax.f32 %v456_v49, 0.0  ;;  %v261_v58 = vmax.f32 %v229_v50, 0.0  ;;  %v359_v59 = vmax.f32 %v327_v51, 0.0  ;;  %v457_v60 = vsub.f32 %v190_v39, %v1057_v9  ;;  %v196_v51 = vld [vmem:[%s1040_s26 + $0xa0] sm:$0xff] }
  0x6f   : > { %v552_v62 = vadd.f32 %v520_v54, %v422_v53  ;;  %v423_v63 = vadd.f32 %v391_v56, %v293_v55  ;;  %v230_v0 = vsub.f32 %v191_v52, %v1049_v3  ;;  %v328_v1 = vsub.f32 %v191_v52, %v1052_v5 }
  0x70   : > { %v521_v2 = vmul.f32 %v1069_v23, %v488_v57  ;;  %v294_v4 = vmul.f32 %v1061_v13, %v261_v58  ;;  %v392_v6 = vmul.f32 %v1064_v17, %v359_v59  ;;  %v489_v7 = vmax.f32 %v457_v60, 0.0 }
  0x71   : > { %584 = vst [vmem:[%s1089_s20 + $0x60] sm:$0xff] %v552_v62  ;;  %v262_v8 = vmax.f32 %v230_v0, 0.0  ;;  %v360_v10 = vmax.f32 %v328_v1, 0.0  ;;  %v458_v11 = vsub.f32 %v191_v52, %v1057_v9  ;;  %v231_v12 = vsub.f32 %v192_v61, %v1049_v3  ;;  %v197_v0 = vld [vmem:[%s1040_s26 + $0xa8] sm:$0xff] }
  0x72   : > { %v553_v15 = vadd.f32 %v521_v2, %v423_v63  ;;  %v424_v16 = vadd.f32 %v392_v6, %v294_v4  ;;  %v522_v18 = vmul.f32 %v1069_v23, %v489_v7  ;;  %v329_v19 = vsub.f32 %v192_v61, %v1052_v5 }
  0x73   : > { %v295_v20 = vmul.f32 %v1061_v13, %v262_v8  ;;  %v393_v21 = vmul.f32 %v1064_v17, %v360_v10  ;;  %v490_v22 = vmax.f32 %v458_v11, 0.0  ;;  %v263_v24 = vmax.f32 %v231_v12, 0.0 }
  0x74   : > { %585 = vst [vmem:[%s1089_s20 + $0x68] sm:$0xff] %v553_v15  ;;  %v554_v25 = vadd.f32 %v522_v18, %v424_v16  ;;  %v361_v26 = vmax.f32 %v329_v19, 0.0  ;;  %v459_v27 = vsub.f32 %v192_v61, %v1057_v9  ;;  %v232_v28 = vsub.f32 %v193_v14, %v1049_v3  ;;  %v198_v18 = vld [vmem:[%s1040_s26 + $0xb0] sm:$0xff] }
  0x75   : > { %v425_v30 = vadd.f32 %v393_v21, %v295_v20  ;;  %v523_v31 = vmul.f32 %v1069_v23, %v490_v22  ;;  %v296_v32 = vmul.f32 %v1061_v13, %v263_v24  ;;  %v330_v33 = vsub.f32 %v193_v14, %v1052_v5 }
  0x76   : > { %586 = vst [vmem:[%s1089_s20 + $0x70] sm:$0xff] %v554_v25  ;;  %v394_v34 = vmul.f32 %v1064_v17, %v361_v26  ;;  %v491_v35 = vmax.f32 %v459_v27, 0.0  ;;  %v264_v36 = vmax.f32 %v232_v28, 0.0  ;;  %v460_v37 = vsub.f32 %v193_v14, %v1057_v9 }
  0x77   : > { %v555_v38 = vadd.f32 %v523_v31, %v425_v30  ;;  %v362_v39 = vmax.f32 %v330_v33, 0.0  ;;  %v233_v40 = vsub.f32 %v194_v29, %v1049_v3  ;;  %v331_v41 = vsub.f32 %v194_v29, %v1052_v5 }
  0x78   : > { %v426_v43 = vadd.f32 %v394_v34, %v296_v32  ;;  %v524_v44 = vmul.f32 %v1069_v23, %v491_v35  ;;  %v297_v45 = vmul.f32 %v1061_v13, %v264_v36  ;;  %v492_v46 = vmax.f32 %v460_v37, 0.0  ;;  %v199_v32 = vld [vmem:[%s1040_s26 + $0xb8] sm:$0xff] }
  0x79   : > { %587 = vst [vmem:[%s1089_s20 + $0x78] sm:$0xff] %v555_v38  ;;  %v395_v47 = vmul.f32 %v1064_v17, %v362_v39  ;;  %v265_v48 = vmax.f32 %v233_v40, 0.0  ;;  %v363_v49 = vmax.f32 %v331_v41, 0.0  ;;  %v461_v50 = vsub.f32 %v194_v29, %v1057_v9  ;;  %v200_v41 = vld [vmem:[%s1040_s26 + $0xc0] sm:$0xff] }
  0x7a   : > { %v556_v52 = vadd.f32 %v524_v44, %v426_v43  ;;  %v525_v53 = vmul.f32 %v1069_v23, %v492_v46  ;;  %v234_v54 = vsub.f32 %v195_v42, %v1049_v3  ;;  %v332_v55 = vsub.f32 %v195_v42, %v1052_v5 }
  0x7b   : > { %v427_v56 = vadd.f32 %v395_v47, %v297_v45  ;;  %v298_v57 = vmul.f32 %v1061_v13, %v265_v48  ;;  %v396_v58 = vmul.f32 %v1064_v17, %v363_v49  ;;  %v493_v59 = vmax.f32 %v461_v50, 0.0 }
  0x7c   : > { %588 = vst [vmem:[%s1089_s20 + $0x80] sm:$0xff] %v556_v52  ;;  %v266_v60 = vmax.f32 %v234_v54, 0.0  ;;  %v364_v61 = vmax.f32 %v332_v55, 0.0  ;;  %v462_v62 = vsub.f32 %v195_v42, %v1057_v9  ;;  %v235_v63 = vsub.f32 %v196_v51, %v1049_v3  ;;  %v201_v54 = vld [vmem:[%s1040_s26 + $0xc8] sm:$0xff] }
  0x7d   : > { %v557_v1 = vadd.f32 %v525_v53, %v427_v56  ;;  %v428_v2 = vadd.f32 %v396_v58, %v298_v57  ;;  %v526_v4 = vmul.f32 %v1069_v23, %v493_v59  ;;  %v333_v6 = vsub.f32 %v196_v51, %v1052_v5 }
  0x7e   : > { %v299_v7 = vmul.f32 %v1061_v13, %v266_v60  ;;  %v397_v8 = vmul.f32 %v1064_v17, %v364_v61  ;;  %v494_v10 = vmax.f32 %v462_v62, 0.0  ;;  %v267_v11 = vmax.f32 %v235_v63, 0.0 }
  0x7f   : > { %589 = vst [vmem:[%s1089_s20 + $0x88] sm:$0xff] %v557_v1  ;;  %v558_v12 = vadd.f32 %v526_v4, %v428_v2  ;;  %v365_v14 = vmax.f32 %v333_v6, 0.0  ;;  %v463_v15 = vsub.f32 %v196_v51, %v1057_v9  ;;  %v236_v16 = vsub.f32 %v197_v0, %v1049_v3  ;;  %v202_v4 = vld [vmem:[%s1040_s26 + $0xd0] sm:$0xff] }
  0x80   : > { %v429_v19 = vadd.f32 %v397_v8, %v299_v7  ;;  %v527_v20 = vmul.f32 %v1069_v23, %v494_v10  ;;  %v300_v21 = vmul.f32 %v1061_v13, %v267_v11  ;;  %v334_v22 = vsub.f32 %v197_v0, %v1052_v5 }
  0x81   : > { %590 = vst [vmem:[%s1089_s20 + $0x90] sm:$0xff] %v558_v12  ;;  %v398_v24 = vmul.f32 %v1064_v17, %v365_v14  ;;  %v495_v25 = vmax.f32 %v463_v15, 0.0  ;;  %v268_v26 = vmax.f32 %v236_v16, 0.0  ;;  %v464_v27 = vsub.f32 %v197_v0, %v1057_v9 }
  0x82   : > { %v559_v28 = vadd.f32 %v527_v20, %v429_v19  ;;  %v366_v29 = vmax.f32 %v334_v22, 0.0  ;;  %v237_v30 = vsub.f32 %v198_v18, %v1049_v3  ;;  %v335_v31 = vsub.f32 %v198_v18, %v1052_v5 }
  0x83   : > { %v430_v33 = vadd.f32 %v398_v24, %v300_v21  ;;  %v528_v34 = vmul.f32 %v1069_v23, %v495_v25  ;;  %v301_v35 = vmul.f32 %v1061_v13, %v268_v26  ;;  %v496_v36 = vmax.f32 %v464_v27, 0.0  ;;  %v203_v21 = vld [vmem:[%s1040_s26 + $0xd8] sm:$0xff] }
  0x84   : > { %591 = vst [vmem:[%s1089_s20 + $0x98] sm:$0xff] %v559_v28  ;;  %v399_v37 = vmul.f32 %v1064_v17, %v366_v29  ;;  %v269_v38 = vmax.f32 %v237_v30, 0.0  ;;  %v367_v39 = vmax.f32 %v335_v31, 0.0  ;;  %v465_v40 = vsub.f32 %v198_v18, %v1057_v9  ;;  %v204_v31 = vld [vmem:[%s1040_s26 + $0xe0] sm:$0xff] }
  0x85   : > { %v560_v42 = vadd.f32 %v528_v34, %v430_v33  ;;  %v529_v43 = vmul.f32 %v1069_v23, %v496_v36  ;;  %v238_v44 = vsub.f32 %v199_v32, %v1049_v3  ;;  %v336_v45 = vsub.f32 %v199_v32, %v1052_v5 }
  0x86   : > { %v431_v46 = vadd.f32 %v399_v37, %v301_v35  ;;  %v302_v47 = vmul.f32 %v1061_v13, %v269_v38  ;;  %v400_v48 = vmul.f32 %v1064_v17, %v367_v39  ;;  %v497_v49 = vmax.f32 %v465_v40, 0.0 }
  0x87   : > { %592 = vst [vmem:[%s1089_s20 + $0xa0] sm:$0xff] %v560_v42  ;;  %v270_v50 = vmax.f32 %v238_v44, 0.0  ;;  %v368_v51 = vmax.f32 %v336_v45, 0.0  ;;  %v466_v52 = vsub.f32 %v199_v32, %v1057_v9  ;;  %v239_v53 = vsub.f32 %v200_v41, %v1049_v3  ;;  %v205_v44 = vld [vmem:[%s1040_s26 + $0xe8] sm:$0xff] }
  0x88   : > { %v561_v55 = vadd.f32 %v529_v43, %v431_v46  ;;  %v432_v56 = vadd.f32 %v400_v48, %v302_v47  ;;  %v530_v57 = vmul.f32 %v1069_v23, %v497_v49  ;;  %v337_v58 = vsub.f32 %v200_v41, %v1052_v5 }
  0x89   : > { %v303_v59 = vmul.f32 %v1061_v13, %v270_v50  ;;  %v401_v60 = vmul.f32 %v1064_v17, %v368_v51  ;;  %v498_v61 = vmax.f32 %v466_v52, 0.0  ;;  %v271_v62 = vmax.f32 %v239_v53, 0.0 }
  0x8a   : > { %593 = vst [vmem:[%s1089_s20 + $0xa8] sm:$0xff] %v561_v55  ;;  %v562_v63 = vadd.f32 %v530_v57, %v432_v56  ;;  %v369_v0 = vmax.f32 %v337_v58, 0.0  ;;  %v467_v1 = vsub.f32 %v200_v41, %v1057_v9  ;;  %v240_v2 = vsub.f32 %v201_v54, %v1049_v3  ;;  %v206_v57 = vld [vmem:[%s1040_s26 + $0xf0] sm:$0xff] }
  0x8b   : > { %v433_v6 = vadd.f32 %v401_v60, %v303_v59  ;;  %v531_v7 = vmul.f32 %v1069_v23, %v498_v61  ;;  %v304_v8 = vmul.f32 %v1061_v13, %v271_v62  ;;  %v338_v10 = vsub.f32 %v201_v54, %v1052_v5 }
  0x8c   : > { %594 = vst [vmem:[%s1089_s20 + $0xb0] sm:$0xff] %v562_v63  ;;  %v402_v11 = vmul.f32 %v1064_v17, %v369_v0  ;;  %v499_v12 = vmax.f32 %v467_v1, 0.0  ;;  %v272_v14 = vmax.f32 %v240_v2, 0.0  ;;  %v468_v15 = vsub.f32 %v201_v54, %v1057_v9 }
  0x8d   : > { %v563_v16 = vadd.f32 %v531_v7, %v433_v6  ;;  %v370_v18 = vmax.f32 %v338_v10, 0.0  ;;  %v241_v19 = vsub.f32 %v202_v4, %v1049_v3  ;;  %v339_v20 = vsub.f32 %v202_v4, %v1052_v5 }
  0x8e   : > { %v434_v22 = vadd.f32 %v402_v11, %v304_v8  ;;  %v532_v24 = vmul.f32 %v1069_v23, %v499_v12  ;;  %v305_v25 = vmul.f32 %v1061_v13, %v272_v14  ;;  %v500_v26 = vmax.f32 %v468_v15, 0.0  ;;  %v207_v8 = vld [vmem:[%s1040_s26 + $0xf8] sm:$0xff] }
  0x8f   : > { %595 = vst [vmem:[%s1089_s20 + $0xb8] sm:$0xff] %v563_v16  ;;  %v403_v27 = vmul.f32 %v1064_v17, %v370_v18  ;;  %v273_v28 = vmax.f32 %v241_v19, 0.0  ;;  %v371_v29 = vmax.f32 %v339_v20, 0.0  ;;  %v469_v30 = vsub.f32 %v202_v4, %v1057_v9 }
  0x90   : > { %v564_v32 = vadd.f32 %v532_v24, %v434_v22  ;;  %v533_v33 = vmul.f32 %v1069_v23, %v500_v26  ;;  %v242_v34 = vsub.f32 %v203_v21, %v1049_v3  ;;  %v340_v35 = vsub.f32 %v203_v21, %v1052_v5 }
  0x91   : > { %v435_v36 = vadd.f32 %v403_v27, %v305_v25  ;;  %v306_v37 = vmul.f32 %v1061_v13, %v273_v28  ;;  %v404_v38 = vmul.f32 %v1064_v17, %v371_v29  ;;  %v501_v39 = vmax.f32 %v469_v30, 0.0 }
  0x92   : > { %596 = vst [vmem:[%s1089_s20 + $0xc0] sm:$0xff] %v564_v32  ;;  %v274_v40 = vmax.f32 %v242_v34, 0.0  ;;  %v372_v41 = vmax.f32 %v340_v35, 0.0  ;;  %v470_v42 = vsub.f32 %v203_v21, %v1057_v9  ;;  %v243_v43 = vsub.f32 %v204_v31, %v1049_v3 }
  0x93   : > { %v565_v45 = vadd.f32 %v533_v33, %v435_v36  ;;  %v436_v46 = vadd.f32 %v404_v38, %v306_v37  ;;  %v534_v47 = vmul.f32 %v1069_v23, %v501_v39  ;;  %v341_v48 = vsub.f32 %v204_v31, %v1052_v5 }
  0x94   : > { %v307_v49 = vmul.f32 %v1061_v13, %v274_v40  ;;  %v405_v50 = vmul.f32 %v1064_v17, %v372_v41  ;;  %v502_v51 = vmax.f32 %v470_v42, 0.0  ;;  %v275_v52 = vmax.f32 %v243_v43, 0.0 }
  0x95   : > { %597 = vst [vmem:[%s1089_s20 + $0xc8] sm:$0xff] %v565_v45  ;;  %v566_v53 = vadd.f32 %v534_v47, %v436_v46  ;;  %v373_v54 = vmax.f32 %v341_v48, 0.0  ;;  %v471_v55 = vsub.f32 %v204_v31, %v1057_v9  ;;  %v244_v56 = vsub.f32 %v205_v44, %v1049_v3 }
  0x96   : > { %v437_v58 = vadd.f32 %v405_v50, %v307_v49  ;;  %v535_v59 = vmul.f32 %v1069_v23, %v502_v51  ;;  %v308_v60 = vmul.f32 %v1061_v13, %v275_v52  ;;  %v342_v61 = vsub.f32 %v205_v44, %v1052_v5 }
  0x97   : > { %598 = vst [vmem:[%s1089_s20 + $0xd0] sm:$0xff] %v566_v53  ;;  %v406_v62 = vmul.f32 %v1064_v17, %v373_v54  ;;  %v503_v63 = vmax.f32 %v471_v55, 0.0  ;;  %v276_v0 = vmax.f32 %v244_v56, 0.0  ;;  %v472_v1 = vsub.f32 %v205_v44, %v1057_v9 }
  0x98   : > { %v567_v2 = vadd.f32 %v535_v59, %v437_v58  ;;  %v374_v4 = vmax.f32 %v342_v61, 0.0  ;;  %v245_v6 = vsub.f32 %v206_v57, %v1049_v3  ;;  %v343_v7 = vsub.f32 %v206_v57, %v1052_v5 }
  0x99   : > { %v438_v10 = vadd.f32 %v406_v62, %v308_v60  ;;  %v536_v11 = vmul.f32 %v1069_v23, %v503_v63  ;;  %v309_v12 = vmul.f32 %v1061_v13, %v276_v0  ;;  %v504_v14 = vmax.f32 %v472_v1, 0.0 }
  0x9a   : > { %599 = vst [vmem:[%s1089_s20 + $0xd8] sm:$0xff] %v567_v2  ;;  %v407_v15 = vmul.f32 %v1064_v17, %v374_v4  ;;  %v277_v16 = vmax.f32 %v245_v6, 0.0  ;;  %v375_v18 = vmax.f32 %v343_v7, 0.0  ;;  %v473_v19 = vsub.f32 %v206_v57, %v1057_v9 }
  0x9b   : > { %v568_v20 = vadd.f32 %v536_v11, %v438_v10  ;;  %v537_v21 = vmul.f32 %v1069_v23, %v504_v14  ;;  %v246_v22 = vsub.f32 %v207_v8, %v1049_v3  ;;  %v344_v24 = vsub.f32 %v207_v8, %v1052_v5 }
  0x9c   : > { %v439_v25 = vadd.f32 %v407_v15, %v309_v12  ;;  %v310_v26 = vmul.f32 %v1061_v13, %v277_v16  ;;  %v408_v27 = vmul.f32 %v1064_v17, %v375_v18  ;;  %v505_v28 = vmax.f32 %v473_v19, 0.0 }
  0x9d   : > { %600 = vst [vmem:[%s1089_s20 + $0xe0] sm:$0xff] %v568_v20  ;;  %v278_v29 = vmax.f32 %v246_v22, 0.0  ;;  %v376_v30 = vmax.f32 %v344_v24, 0.0  ;;  %v474_v31 = vsub.f32 %v207_v8, %v1057_v9 }
  0x9e   : > { %v569_v32 = vadd.f32 %v537_v21, %v439_v25  ;;  %v440_v3 = vadd.f32 %v408_v27, %v310_v26  ;;  %v538_v5 = vmul.f32 %v1069_v23, %v505_v28 }
  0x9f   : > { %v311_v33 = vmul.f32 %v1061_v13, %v278_v29  ;;  %v409_v34 = vmul.f32 %v1064_v17, %v376_v30  ;;  %v506_v35 = vmax.f32 %v474_v31, 0.0 }
  0xa0   : > { %601 = vst [vmem:[%s1089_s20 + $0xe8] sm:$0xff] %v569_v32  ;;  %v570_v36 = vadd.f32 %v538_v5, %v440_v3 }
  0xa1   : > { %v441_v37 = vadd.f32 %v409_v34, %v311_v33  ;;  %v539_v38 = vmul.f32 %v1069_v23, %v506_v35 }
  0xa2   : > { %602 = vst [vmem:[%s1089_s20 + $0xf0] sm:$0xff] %v570_v36 }
  0xa3   : > { %v571_v9 = vadd.f32 %v539_v38, %v441_v37 }
  0xa5   : > { %603 = vst [vmem:[%s1089_s20 + $0xf8] sm:$0xff] %v571_v9 }
  0xa6   : > { %839 = shalt.err (!%p836_p0)
}
  0xa7   : > { %s840_s16 = scalar_lea.hbm %s1322_s29, 4096  ;;  %s844_s5 = scalar_lea.hbm %s1370_s2, 8192 }
  0xa8   : > { %p841_p3 = scmp.ne.s32.totalorder %s1322_s29, %s840_s16  ;;  %p845_p1 = scmp.lt.s32.totalorder %s1322_s29, %s1370_s2 }
  0xa9   : > { %p846_p6 = scmp.lt.s32.totalorder %s844_s5, %s840_s16 }
  0xaa   : > { %p842_p5 = pnand %p841_p3, %p1386_p13 }
  0xab   : > { %p847_p11 = por %p846_p6, %p845_p1 }
  0xac   : > { %p843_p4 = pneg %p842_p5 }
  0xae   : > { %p848_p12 = pnand %p847_p11, %p843_p4 }
  0xb0   : > { %851 = shalt.err (!%p848_p12)
}
  0xb1   : > { %s901_s17 = smov 128   ;;  %s902_s19 = smov 8  }
  0xb2   : > { %732 = dma.vmem_to_hbm [thread:$0]  (%p1386_p13), %s1324_s28, 4096, %s1322_s29, %s605_s13, %s901_s17, %s901_s17, %s902_s19  }
  0xb3 PF: > { %s633_s20 = sand.u32 1, %s882_s9   ;;  %p1387_p7 = scmp.ne.s32.totalorder %s1378_s22, 0 }
  0xb4   : > { %p1388_p8 = scmp.ge.s32.totalorder %s894_s12, 2  ;;  %s634_s25 = scalar_lea.sflag [#allocation4], %s633_s20 }
  0xb6   : > { %p743_p9 = pnand %p1388_p8, %p1387_p7 }
  0xb8   : > { %p744_p10 = pneg %p743_p9 }
  0xba   : > { %877 = dma.done.wait (%p744_p10), %s634_s25, 4096  }
  0xbb   : > { %879 = vsyncadd (%p744_p10), %s634_s25, 4294963200  ;;  %p16_p2 = scmp.ge.s32.totalorder %s943_s15, 4   ;;  %s1389_s9 = smov %s886_s10 }
  0xbc   : > { %s1390_s10 = smov %s890_s11  ;;  %s1391_s11 = smov %s955_s18 }
  0xbd   : > { %s1392_s12 = smov %s943_s15  ;;  %18 = sbr.rel (!%p16_p2) target bundleno = 6 (0x6), region = 78 }
  0xc2   :  { %639 = vsyncpa [#allocation3], 1 }
  0xc3   :  { %641 = vsyncpa [#allocation3 + $0x1], 1 }
  0xc4   :  { %642 = vsyncpa [#allocation4], 1 }
  0xc5   :  { %644 = vsyncpa [#allocation4 + $0x1], 1 }
  0xc6   :  { %645 = vsyncpa [#allocation5], 1 }
  0xc7   :  { %647 = vsyncpa [#allocation5 + $0x1], 1 }

</bundles_post_ra>
